<compile_context>
chip_gen: v5e
topology: v5e:2x2
jax: 0.10.0
libtpu: 0.0.40
codegen_flags: <defaults>
</compile_context>

<pallas_src>
import functools

import jax
import jax.numpy as jnp
from jax import lax
from jax.experimental import pallas as pl
from jax.experimental.pallas import tpu as pltpu

_LANE = 128


def _cdiv(a, b):
    return -(-a // b)


def _round_up(a, b):
    return _cdiv(a, b) * b


def _rmsnorm_kernel(x_ref, g_ref, o_ref, *, eps):
    # x_ref: (TILE_B, C, TILE_LANE) block ; g_ref: (C, 1) float32, sqrt(C) pre-folded.
    x = x_ref[...].astype(jnp.float32)
    g = g_ref[...]                                    # (C, 1) -> broadcasts over (TB, C, L)

    # F.normalize(x, dim=1) * g * sqrt(C)
    #   == x * rsqrt(max(sum_c x^2, eps^2)) * (g * sqrt(C))
    sumsq = jnp.sum(x * x, axis=1, keepdims=True)     # (TB, 1, L)
    inv = lax.rsqrt(jnp.maximum(sumsq, eps * eps))    # exact rsqrt on the reduced array (EUP)
    o_ref[...] = (x * inv * g).astype(o_ref.dtype)


def _device_params():
    """(per-block resident-VMEM budget in bytes, #TensorCores to keep fed)."""
    kind = ""
    try:
        kind = jax.devices()[0].device_kind.lower()
    except Exception:
        pass
    if "v5 lite" in kind or "v5lite" in kind or "v5e" in kind:
        return 8 << 20, 1       # 16 MiB default scoped VMEM on v5e -> stay well under
    if "v7" in kind:
        return 12 << 20, 2      # 64 MiB physical VMEM, 3.2 TB/s HBM, 2 TCs/chip
    if "v6" in kind:
        return 10 << 20, 1      # >=1 MiB f32 tiles are already ~85% of HBM roofline
    return 8 << 20, 1           # unknown / v4 / v5p: conservative


def _choose_tiles(B, n_units, unit_bytes, budget, n_cores):
    """Pick (tile_b, tile_units); a 'unit' is one 128-lane spatial column across all
    channels of one batch item, costed at its honest resident-VMEM footprint."""
    max_units = max(1, budget // unit_bytes)
    if n_units <= max_units:
        # Whole spatial extent fits in one block: merge batch items too, so several
        # batch items ride one grid step / one contiguous DMA (amortizes step overhead).
        tile_u = n_units
        tile_b = max(1, min(B, max_units // n_units))
    else:
        tile_u = max_units
        tile_b = 1
    # Megacore (v7x): keep >= n_cores grid steps on the parallel axes so both
    # TensorCores stream HBM.  No-op on single-TC v5e / v6e.
    while n_cores > 1 and _cdiv(B, tile_b) * _cdiv(n_units, tile_u) < n_cores:
        if tile_b > 1:
            tile_b = _cdiv(tile_b, 2)
        elif tile_u > 1:
            tile_u = _cdiv(tile_u, 2)
        else:
            break
    return tile_b, tile_u


def rmsnorm(x, g, *, eps=1e-12):
    """x: (B, C, H, W), g: any shape with C elements (e.g. (1, C, 1, 1)).
    Returns F.normalize(x, dim=1) * g * sqrt(C) in NCHW, matching the PyTorch module."""
    B, C, H, W = x.shape
    S = H * W

    # Fold sqrt(C) into g once, kept in float32 (re-rounding a bf16 g here would diverge
    # slightly from the reference, which applies the scale in higher precision).
    g_col = g.reshape(C, 1).astype(jnp.float32) * (float(C) ** 0.5)

    itemsize = jnp.dtype(x.dtype).itemsize
    sub = max(8, 32 // max(1, itemsize))     # dtype-aware sublane tile: f32->8, bf16->16, int8/fp8->32
    c_pad_dt = _round_up(C, sub)             # channels as resident in x-dtype VMEM tiles
    c_pad_f32 = _round_up(C, 8)              # channels as resident in f32 working copies

    vmem_target, n_cores = _device_params()

    # Honest per-unit VMEM accounting: 2x double-buffered input + 2x output at x.dtype
    # plus ~2 f32 working copies, per 128-lane spatial column across all channels.
    unit_bytes = _LANE * (4 * itemsize * c_pad_dt + 2 * 4 * c_pad_f32)
    n_units = _cdiv(S, _LANE)
    tile_b, tile_u = _choose_tiles(B, n_units, unit_bytes, vmem_target, n_cores)
    tile_lane = S if tile_u >= n_units else tile_u * _LANE    # multiple of 128, or full extent
    grid = (_cdiv(B, tile_b), _cdiv(S, tile_lane))

    est_vmem = tile_b * tile_u * unit_bytes + 2 * c_pad_f32 * _LANE * 4   # + tiny g buffers
    vmem_limit = int(min(48 << 20, max(est_vmem + (6 << 20), 20 << 20)))

    xs = x.reshape(B, C, S)                  # free reshape; no HBM pad/slice round-trips
    kernel = functools.partial(_rmsnorm_kernel, eps=eps)

    out = pl.pallas_call(
        kernel,
        out_shape=jax.ShapeDtypeStruct((B, C, S), x.dtype),
        grid_spec=pltpu.PrefetchScalarGridSpec(
            num_scalar_prefetch=0,
            grid=grid,
            in_specs=[
                pl.BlockSpec((tile_b, C, tile_lane), lambda b, s: (b, 0, s)),
                pl.BlockSpec((C, 1), lambda b, s: (0, 0)),
            ],
            out_specs=pl.BlockSpec((tile_b, C, tile_lane), lambda b, s: (b, 0, s)),
        ),
        compiler_params=pltpu.CompilerParams(
            dimension_semantics=("parallel", "parallel"),
            vmem_limit_bytes=vmem_limit,
        ),
    )(xs, g_col)

    return out.reshape(B, C, H, W)


def rmsnorm_ref(x, g):
    """Pure-JAX reference matching torch F.normalize(x, dim=1) * g * sqrt(C)."""
    C = x.shape[1]
    norm = jnp.maximum(
        jnp.sqrt(jnp.sum(x.astype(jnp.float32) ** 2, axis=1, keepdims=True)), 1e-12
    )
    return (x / norm * g * (C ** 0.5)).astype(x.dtype)


if __name__ == "__main__":
    key = jax.random.PRNGKey(0)
    B, C, H, W = 2, 4, 16, 16
    x = jax.random.normal(key, (B, C, H, W), dtype=jnp.float32)

    # Deterministic parameter init, matching nn.Parameter(torch.ones(1, dim, 1, 1))
    g = jnp.ones((1, C, 1, 1), dtype=jnp.float32)

    out = jax.block_until_ready(rmsnorm(x, g))

    ref = rmsnorm_ref(x, g)
    assert out.shape == (B, C, H, W)
    assert jnp.allclose(out, ref, atol=1e-5, rtol=1e-5)

    print("KERNEL_OK")
</pallas_src>

<mosaic_0001>
module attributes {stable_mosaic.version = 11 : i64} {
  func.func @_rmsnorm_kernel(%arg0: i32, %arg1: i32, %arg2: memref<2x4x256xf32, #tpu.memory_space<vmem>>, %arg3: memref<4x1xf32, #tpu.memory_space<vmem>>, %arg4: memref<2x4x256xf32, #tpu.memory_space<vmem>>) attributes {dimension_semantics = [#tpu.dimension_semantics<parallel>, #tpu.dimension_semantics<parallel>], iteration_bounds = array<i64: 1, 1>, scalar_prefetch = 0 : i64, scratch_operands = 0 : i64, tpu.core_type = #tpu.core_type<tc>, window_params = [{transform_indices = @transform_0, window_bounds = array<i64: 2, 4, 256>}, {pipeline_mode = #tpu.pipeline_mode<synchronous>, transform_indices = @transform_1, window_bounds = array<i64: 4, 1>}, {transform_indices = @transform_2, window_bounds = array<i64: 2, 4, 256>}]} {
    %c0 = arith.constant 0 : index
    %c0_0 = arith.constant 0 : index
    %c0_1 = arith.constant 0 : index
    %0 = vector.load %arg2[%c0, %c0_0, %c0_1] : memref<2x4x256xf32, #tpu.memory_space<vmem>>, vector<2x4x256xf32>
    %c0_2 = arith.constant 0 : index
    %c0_3 = arith.constant 0 : index
    %1 = vector.load %arg3[%c0_2, %c0_3] : memref<4x1xf32, #tpu.memory_space<vmem>>, vector<4x1xf32>
    %2 = arith.mulf %0, %0 : vector<2x4x256xf32>
    %cst = arith.constant dense<0.000000e+00> : vector<2x256xf32>
    %3 = vector.multi_reduction <add>, %2, %cst [1] : vector<2x4x256xf32> to vector<2x256xf32>
    %4 = vector.shape_cast %3 : vector<2x256xf32> to vector<2x1x256xf32>
    %cst_4 = arith.constant 1.000000e-24 : f32
    %5 = vector.broadcast %cst_4 : f32 to vector<2x1x256xf32>
    %6 = arith.maximumf %4, %5 : vector<2x1x256xf32>
    %7 = math.rsqrt %6 : vector<2x1x256xf32>
    %8 = vector.broadcast %7 : vector<2x1x256xf32> to vector<2x4x256xf32>
    %9 = arith.mulf %0, %8 : vector<2x4x256xf32>
    %10 = vector.shape_cast %1 : vector<4x1xf32> to vector<1x4x1xf32>
    %11 = vector.broadcast %10 : vector<1x4x1xf32> to vector<2x4x256xf32>
    %12 = arith.mulf %9, %11 : vector<2x4x256xf32>
    %c0_5 = arith.constant 0 : index
    %c0_6 = arith.constant 0 : index
    %c0_7 = arith.constant 0 : index
    %13 = vector.load %arg4[%c0_5, %c0_6, %c0_7] : memref<2x4x256xf32, #tpu.memory_space<vmem>>, vector<2x4x256xf32>
    tpu.vector_store %arg4[%c0_5, %c0_6, %c0_7], %12 {strides = array<i32>} : memref<2x4x256xf32, #tpu.memory_space<vmem>>, vector<2x4x256xf32>,
    return
  }
  func.func @transform_0(%arg0: i32, %arg1: i32) -> (i32, i32, i32) {
    %c0_i32 = arith.constant 0 : i32
    %c0_i32_0 = arith.constant 0 : i32
    return %arg0, %c0_i32, %arg1 : i32, i32, i32
  }
  func.func @transform_1(%arg0: i32, %arg1: i32) -> (i32, i32) {
    %c0_i32 = arith.constant 0 : i32
    %c0_i32_0 = arith.constant 0 : i32
    %c0_i32_1 = arith.constant 0 : i32
    return %c0_i32, %c0_i32_0 : i32, i32
  }
  func.func @transform_2(%arg0: i32, %arg1: i32) -> (i32, i32, i32) {
    %c0_i32 = arith.constant 0 : i32
    %c0_i32_0 = arith.constant 0 : i32
    return %arg0, %c0_i32, %arg1 : i32, i32, i32
  }
}

</mosaic_0001>

<bundles_post_ra>
// kernel: tpu_custom_call.1
= control target key start
LH: loop header
LB: loop body
LE: loop exit
PB: predicated region body
PF: predicated region fallthrough
CT: control target
= control target key end

     0   :  { %7 = vsyncpa [#allocation3], 0  ;;  %s282_s0 = inlined_call_operand.hbm [shape: f32[2,4,256], index: 0, kind: input, shape index: {}]   ;;  %s283_s1 = inlined_call_operand.vmem [shape: f32[4,1], index: 1, kind: input, shape index: {}]   ;;  %s284_s2 = inlined_call_operand.hbm [shape: f32[2,4,256], index: 2, kind: output, shape index: {}]  }
   0x1   :  { %8 = vsyncpa [#allocation4], 0  ;;  %s13_s11 = sshll.u32 %s282_s0, 4  ;;  %s230_s12 = smov [#allocation2]   ;;  %s14_s11 = int_to_ptr.hbm [resolvable:$true] %s13_s11 }
   0x2   :  { %s15_s13 = sshll.u32 %s230_s12, 4  ;;  %s231_s14 = smov 128   ;;  %s16_s13 = int_to_ptr.vmem [resolvable:$true] %s15_s13 }
   0x3   :  { %s232_s15 = smov 8  }
   0x4   :  { %21 = dma.hbm_to_vmem [thread:$0]  %s14_s11, 256, %s16_s13, [#allocation3], %s231_s14, %s231_s14, %s232_s15  }
   0x5   :  { %226 = dma.done.wait [#allocation3], 256  }
   0x6   :  { %227 = vsyncadd [#allocation3], 4294967040  ;;  %v233_v0 = vmov 0   ;;  %v30_v1 = vld [vmem:[%s283_s1] sm:$0xf]  ;;  %v260_v2 = vld [vmem:[#allocation2] sm:$0xff] }
   0x7   :  { %169 = vset.pattern.permute.xlu0 %v233_v0  ;;  %v262_v3 = vld [vmem:[#allocation2 + $0x8] sm:$0xff]  ;;  %v31_v4 = vmul.f32 %v260_v2, %v260_v2  ;;  %vm46_vm0 = vcmask 1043456   ;;  %s235_s0 = smov [#allocation5]   ;;  %s150_s20 = sshll.u32 %s284_s2, 4  ;;  %s151_s20 = int_to_ptr.hbm [resolvable:$true] %s150_s20 }
   0x8   :  { %133 = vperm.xlu0 %169, %v30_v1   ;;  %v32_v5 = vmul.f32 %v262_v3, %v262_v3  ;;  %s148_s1 = sshll.u32 %s235_s0, 4  ;;  %s149_s1 = int_to_ptr.vmem [resolvable:$true] %s148_s1 }
   0x9   :  { %35 = vst [vmem:[#allocation1] ss:$2 sm:$0xff] %v31_v4 }
   0xa   :  { %39 = vst [vmem:[#allocation1 + $0x10] ss:$2 sm:$0xff] %v32_v5 }
  0x10   :  { %v37_v6 = vld.sshfl [vmem:[#allocation1 + $0x8] sm:$0xff pattern:$0x75316420]  ;;  %v36_v9 = vld.sshfl [vmem:[#allocation1] sm:$0xff pattern:$0x75316420] }
  0x11   :  { %v41_v7 = vld.sshfl [vmem:[#allocation1 + $0x18] sm:$0xff pattern:$0x75316420]  ;;  %v54_v8 = vsel %vm46_vm0, %v37_v6, 0.0  ;;  %v47_v11 = vsel %vm46_vm0, %v36_v9, 0.0 }
  0x12   :  { %v40_v10 = vld.sshfl [vmem:[#allocation1 + $0x10] sm:$0xff pattern:$0x75316420]  ;;  %v55_v12 = vrot.slane %v54_v8, 4  ;;  %v68_v14 = vsel %vm46_vm0, %v41_v7, 0.0  ;;  %v48_v15 = vrot.slane %v47_v11, 4 }
  0x13   :  { %v61_v13 = vsel %vm46_vm0, %v40_v10, 0.0  ;;  %v69_v17 = vrot.slane %v68_v14, 4 }
  0x14   :  { %v62_v16 = vrot.slane %v61_v13, 4  ;;  %v56_v18 = vadd.f32 %v55_v12, %v54_v8  ;;  %v49_v20 = vadd.f32 %v48_v15, %v47_v11  ;;  %v234_v8 = vmov 839922192  }
  0x15   :  { %v70_v19 = vadd.f32 %v69_v17, %v68_v14  ;;  %v136_v9 = vunpack.c.l.s4 %v234_v8 }
  0x16   :  { %v57_v21 = vrot.slane %v56_v18, 2  ;;  %v63_v22 = vadd.f32 %v62_v16, %v61_v13  ;;  %v50_v24 = vrot.slane %v49_v20, 2 }
  0x17   :  { %v71_v23 = vrot.slane %v70_v19, 2  ;;  %v137_v14 = vunpack.c.0.s8 %v136_v9 }
  0x18   :  { %v58_v25 = vadd.f32 %v57_v21, %v56_v18  ;;  %v64_v26 = vrot.slane %v63_v22, 2  ;;  %v51_v28 = vadd.f32 %v50_v24, %v49_v20 }
  0x19   :  { %v72_v27 = vadd.f32 %v71_v23, %v70_v19 }
  0x1a   :  { %v59_v29 = vrot.slane %v58_v25, 1  ;;  %v65_v30 = vadd.f32 %v64_v26, %v63_v22  ;;  %v52_v32 = vrot.slane %v51_v28, 1 }
  0x1b   :  { %v73_v31 = vrot.slane %v72_v27, 1 }
  0x1c   :  { %v60_v33 = vadd.f32 %v59_v29, %v58_v25  ;;  %v66_v34 = vrot.slane %v65_v30, 1  ;;  %v53_v36 = vadd.f32 %v52_v32, %v51_v28 }
  0x1d   :  { %v74_v35 = vadd.f32 %v73_v31, %v72_v27 }
  0x1e   :  { %v76_v37 = vmax.f32 %v60_v33, 1e-24  ;;  %v67_v38 = vadd.f32 %v66_v34, %v65_v30  ;;  %v75_v40 = vmax.f32 %v53_v36, 1e-24 }
  0x1f   :  { %v78_v39 = vmax.f32 %v74_v35, 1e-24 }
  0x20   :  { %170 = vrsqrt.f32 %v76_v37  ;;  %v77_v41 = vmax.f32 %v67_v38, 1e-24  ;;  %vm95_vm1 = vweird.f32 %v76_v37  ;;  %vm85_vm6 = vweird.f32 %v75_v40 }
  0x21   :  { %172 = vrsqrt.f32 %v78_v39  ;;  %vm115_vm3 = vweird.f32 %v78_v39 }
  0x22   :  { %174 = vrsqrt.f32 %v75_v40  ;;  %vm105_vm9 = vweird.f32 %v77_v41 }
  0x23   :  { %176 = vrsqrt.f32 %v77_v41 }
  0x26   :  { %v171_v42 = vpop.eup %170 }
  0x27   :  { %v173_v43 = vpop.eup %172  ;;  %v90_v45 = vmul.f32 %v171_v42, %v76_v37  ;;  %vm96_vm2 = vweird.f32 %v171_v42 }
  0x28   :  { %v175_v44 = vpop.eup %174  ;;  %v110_v46 = vmul.f32 %v173_v43, %v78_v39  ;;  %vm116_vm4 = vweird.f32 %v173_v43  ;;  %vm97_vm5 = vmor %vm95_vm1, %vm96_vm2 }
  0x29   :  { %v177_v47 = vpop.eup %176  ;;  %v80_v48 = vmul.f32 %v175_v44, %v75_v40  ;;  %v91_v49 = vmul.f32 %v171_v42, %v90_v45  ;;  %vm86_vm7 = vweird.f32 %v175_v44  ;;  %vm117_vm8 = vmor %vm115_vm3, %vm116_vm4 }
  0x2a   :  { %v100_v50 = vmul.f32 %v177_v47, %v77_v41  ;;  %v111_v51 = vmul.f32 %v173_v43, %v110_v46  ;;  %vm106_vm10 = vweird.f32 %v177_v47  ;;  %vm87_vm11 = vmor %vm85_vm6, %vm86_vm7 }
  0x2b   :  { %v81_v52 = vmul.f32 %v175_v44, %v80_v48  ;;  %v92_v53 = vmul.f32 0.5, %v91_v49  ;;  %vm107_vm12 = vmor %vm105_vm9, %vm106_vm10 }
  0x2c   :  { %v101_v54 = vmul.f32 %v177_v47, %v100_v50  ;;  %v112_v55 = vmul.f32 0.5, %v111_v51 }
  0x2d   :  { %v82_v56 = vmul.f32 0.5, %v81_v52  ;;  %v93_v57 = vsub.f32 1.5, %v92_v53 }
  0x2e   :  { %v102_v58 = vmul.f32 0.5, %v101_v54  ;;  %v113_v59 = vsub.f32 1.5, %v112_v55 }
  0x2f   :  { %v83_v60 = vsub.f32 1.5, %v82_v56  ;;  %v94_v61 = vmul.f32 %v171_v42, %v93_v57 }
  0x30   :  { %v103_v62 = vsub.f32 1.5, %v102_v58  ;;  %v114_v63 = vmul.f32 %v173_v43, %v113_v59 }
  0x31   :  { %v84_v0 = vmul.f32 %v175_v44, %v83_v60  ;;  %v98_v1 = vsel %vm97_vm5, %v171_v42, %v94_v61 }
  0x32   :  { %v104_v4 = vmul.f32 %v177_v47, %v103_v62  ;;  %v118_v5 = vsel %vm117_vm8, %v173_v43, %v114_v63  ;;  %v123_v6 = vrot.slane %v98_v1, 4 }
  0x33   :  { %v124_v7 = vrot.slane %v118_v5, 4  ;;  %v88_v10 = vsel %vm87_vm11, %v175_v44, %v84_v0 }
  0x34   :  { %v108_v11 = vsel %vm107_vm12, %v177_v47, %v104_v4  ;;  %v125_v12 = vsel %vm46_vm0, %v88_v10, %v123_v6 }
  0x35   :  { %v126_v13 = vsel %vm46_vm0, %v108_v11, %v124_v7  ;;  %v129_v15 = vmul.f32 %v125_v12, %v260_v2 }
  0x36   :  { %v130_v16 = vmul.f32 %v126_v13, %v262_v3 }
  0x7a   :  { %v134_v17 = vpop.permute.xlu0 %133 }
  0x7b   :  { %v138_v18 = vperm.slane %v134_v17, %v137_v14 }
  0x7d   :  { %v140_v19 = vmul.f32 %v138_v18, %v129_v15  ;;  %v141_v20 = vmul.f32 %v138_v18, %v130_v16 }
  0x7f   :  { %142 = vst [vmem:[#allocation5] sm:$0xff] %v140_v19 }
  0x80   :  { %143 = vst [vmem:[#allocation5 + $0x8] sm:$0xff] %v141_v20 }
  0x81   :  { %156 = dma.vmem_to_hbm [thread:$0]  %s149_s1, 256, %s151_s20, [#allocation4], %s231_s14, %s231_s14, %s232_s15  }
  0x82   :  { %228 = dma.done.wait [#allocation4], 256  }
  0x83   :  { %229 = vsyncadd [#allocation4], 4294967040 }
  0x84   :  { %161 = vsyncpa [#allocation3], 1 }
  0x85   :  { %162 = vsyncpa [#allocation4], 1 }

</bundles_post_ra>
